<compile_context>
chip_gen: v6e
topology: v6e:2x2x1
jax: 0.10.0
libtpu: 0.0.40
codegen_flags: <defaults>
</compile_context>

<pallas_src>
import functools

import jax
import jax.numpy as jnp
from jax.experimental import pallas as pl
from jax.experimental.pallas import tpu as pltpu

INPUT_DIM = 2
HIDDEN_DIM = 64


def _drift_mlp_kernel(x_ref, w1_ref, b1_ref, w2_ref, b2_ref, w3_ref, b3_ref,
                      o_ref, *, matmul_dtype):
    # x_ref: (in_dim, block_n) tile — batch on the lane axis.
    xt = x_ref[...]                                      # (in_dim, bn) f32
    w1 = w1_ref[...]                                     # (hid, in_dim)

    # --- Layer 1: Linear(in_dim -> hid) + ReLU, on the VPU.
    # K = in_dim = 2, so an MXU pass would do 1/64th useful work; two broadcast
    # multiply-adds on the VALU are essentially free here.
    in_dim = xt.shape[0]
    acc = w1[:, 0:1] * xt[0:1, :]                        # (hid, bn)
    for k in range(1, in_dim):                           # static unroll (in_dim=2)
        acc = acc + w1[:, k:k + 1] * xt[k:k + 1, :]
    h1 = jnp.maximum(acc + b1_ref[...], 0.0)             # bias (hid,1) broadcasts

    # --- Layer 2: Linear(hid -> hid) + ReLU, on the MXU (N = block_n lane-dense).
    h2 = jnp.dot(w2_ref[...].astype(matmul_dtype), h1.astype(matmul_dtype),
                 preferred_element_type=jnp.float32)
    h2 = jnp.maximum(h2 + b2_ref[...], 0.0)

    # --- Layer 3: Linear(hid -> in_dim); result (in_dim, bn) -> lane-dense store.
    out = jnp.dot(w3_ref[...].astype(matmul_dtype), h2.astype(matmul_dtype),
                  preferred_element_type=jnp.float32)
    o_ref[...] = (out + b3_ref[...]).astype(o_ref.dtype)


def drift_nn_forward(x, params, *, block_n=512, matmul_dtype=jnp.float32):
    """Forward pass of DriftNN.

    x: (N, input_dim) float32 (same calling convention as the PyTorch module).
    params: PyTorch-layout weights (out, in) and biases stored as (out, 1).
    matmul_dtype: operand dtype for the MXU matmuls (jnp.bfloat16 on v6e/v7x
                  for ~2-3x fewer MXU pushes; accumulation stays f32).
    """
    w1, b1, w2, b2, w3, b3 = params
    n, in_dim = x.shape
    hid = w1.shape[0]

    # Batch tiles live on the lane axis -> must be multiples of 128.
    block_n = max(128, (block_n // 128) * 128)
    lane_blocks = pl.cdiv(n, 128)
    if lane_blocks >= 2:
        # Keep >= 2 grid steps when possible so v7x's two TensorCores both work
        # (dimension_semantics=("parallel",) shards the grid across cores).
        block_n = min(block_n, 128 * pl.cdiv(lane_blocks, 2))
    else:
        block_n = 128
    n_pad = block_n * pl.cdiv(n, block_n)
    grid = (n_pad // block_n,)

    # Feature-major (transposed) input, zero-padded on the batch axis.
    xt = x.T
    if n_pad != n:
        xt = jnp.pad(xt, ((0, 0), (0, n_pad - n)))

    # Weights/biases: one full resident block (constant index_map).
    # TODO(synk): mark these pipeline_mode=pl.Buffered(1) once single-buffered
    # resident operands are confirmed supported on the target jax version.
    full = lambda shape: pl.BlockSpec(shape, lambda i: (0, 0))

    flops = 2 * n_pad * (in_dim * hid + hid * hid + hid * in_dim)
    bytes_accessed = 4 * (xt.size + w1.size + b1.size + w2.size + b2.size
                          + w3.size + b3.size + in_dim * n_pad)

    out_t = pl.pallas_call(
        functools.partial(_drift_mlp_kernel, matmul_dtype=matmul_dtype),
        out_shape=jax.ShapeDtypeStruct((in_dim, n_pad), x.dtype),
        grid_spec=pltpu.PrefetchScalarGridSpec(
            num_scalar_prefetch=0,
            grid=grid,
            in_specs=[
                pl.BlockSpec((in_dim, block_n), lambda i: (0, i)),  # x tile
                full((hid, in_dim)),    # w1
                full((hid, 1)),         # b1
                full((hid, hid)),       # w2
                full((hid, 1)),         # b2
                full((in_dim, hid)),    # w3
                full((in_dim, 1)),      # b3
            ],
            out_specs=pl.BlockSpec((in_dim, block_n), lambda i: (0, i)),
        ),
        compiler_params=pltpu.CompilerParams(
            dimension_semantics=("parallel",)),
        cost_estimate=pl.CostEstimate(
            flops=flops, transcendentals=0, bytes_accessed=bytes_accessed),
    )(xt, w1, b1, w2, b2, w3, b3)

    # Back to the caller's (N, in_dim) row-major convention.
    return out_t[:, :n].T


def init_params(key, input_dim=INPUT_DIM, hidden_dim=HIDDEN_DIM,
                dtype=jnp.float32):
    """Deterministic init mimicking PyTorch nn.Linear default
    (uniform(-1/sqrt(fan_in), 1/sqrt(fan_in))), weights in (out, in) layout."""
    ks = jax.random.split(key, 6)

    def linear(kw, kb, fan_in, fan_out):
        bound = 1.0 / jnp.sqrt(jnp.float32(fan_in))
        w = jax.random.uniform(kw, (fan_out, fan_in), dtype, -bound, bound)
        b = jax.random.uniform(kb, (fan_out, 1), dtype, -bound, bound)
        return w, b

    w1, b1 = linear(ks[0], ks[1], input_dim, hidden_dim)
    w2, b2 = linear(ks[2], ks[3], hidden_dim, hidden_dim)
    w3, b3 = linear(ks[4], ks[5], hidden_dim, input_dim)
    return (w1, b1, w2, b2, w3, b3)


def drift_nn_reference(x, params):
    """Pure-JAX reference (PyTorch semantics: y = x @ W.T + b)."""
    w1, b1, w2, b2, w3, b3 = params
    h1 = jnp.maximum(x @ w1.T + b1[:, 0], 0.0)
    h2 = jnp.maximum(h1 @ w2.T + b2[:, 0], 0.0)
    return h2 @ w3.T + b3[:, 0]


if __name__ == "__main__":
    key = jax.random.PRNGKey(0)
    k_params, k_x1, k_x2 = jax.random.split(key, 3)

    params = init_params(k_params)

    # Small batch of 2-D state points, as DriftNN.forward implies.
    batch = 64
    x = jax.random.normal(k_x1, (batch, INPUT_DIM), dtype=jnp.float32)

    out = jax.block_until_ready(drift_nn_forward(x, params))
    ref = drift_nn_reference(x, params)
    assert out.shape == (batch, INPUT_DIM)
    assert jnp.allclose(out, ref, atol=1e-5, rtol=1e-5), "f32 mismatch"

    # Batch not a multiple of 128 exercises the cdiv/padding path + 2-step grid.
    x2 = jax.random.normal(k_x2, (200, INPUT_DIM), dtype=jnp.float32)
    out2 = jax.block_until_ready(drift_nn_forward(x2, params))
    ref2 = drift_nn_reference(x2, params)
    assert out2.shape == (200, INPUT_DIM)
    assert jnp.allclose(out2, ref2, atol=1e-5, rtol=1e-5), "padded f32 mismatch"

    # bf16-operand MXU path (v6e/v7x fast path), f32 accumulate -> loose tol.
    out_bf16 = jax.block_until_ready(
        drift_nn_forward(x, params, matmul_dtype=jnp.bfloat16))
    assert jnp.allclose(out_bf16, ref, atol=2e-2, rtol=2e-2), "bf16 mismatch"

    print("KERNEL_OK")
</pallas_src>

<mosaic_0001>
module attributes {stable_mosaic.version = 11 : i64} {
  func.func @_drift_mlp_kernel(%arg0: i32, %arg1: memref<2x128xf32, #tpu.memory_space<vmem>>, %arg2: memref<64x2xf32, #tpu.memory_space<vmem>>, %arg3: memref<64x1xf32, #tpu.memory_space<vmem>>, %arg4: memref<64x64xf32, #tpu.memory_space<vmem>>, %arg5: memref<64x1xf32, #tpu.memory_space<vmem>>, %arg6: memref<2x64xf32, #tpu.memory_space<vmem>>, %arg7: memref<2x1xf32, #tpu.memory_space<vmem>>, %arg8: memref<2x128xf32, #tpu.memory_space<vmem>>) attributes {dimension_semantics = [#tpu.dimension_semantics<parallel>], iteration_bounds = array<i64: 1>, scalar_prefetch = 0 : i64, scratch_operands = 0 : i64, tpu.core_type = #tpu.core_type<tc>, window_params = [{transform_indices = @transform_0, window_bounds = array<i64: 2, 128>}, {pipeline_mode = #tpu.pipeline_mode<synchronous>, transform_indices = @transform_1, window_bounds = array<i64: 64, 2>}, {pipeline_mode = #tpu.pipeline_mode<synchronous>, transform_indices = @transform_2, window_bounds = array<i64: 64, 1>}, {pipeline_mode = #tpu.pipeline_mode<synchronous>, transform_indices = @transform_3, window_bounds = array<i64: 64, 64>}, {pipeline_mode = #tpu.pipeline_mode<synchronous>, transform_indices = @transform_4, window_bounds = array<i64: 64, 1>}, {pipeline_mode = #tpu.pipeline_mode<synchronous>, transform_indices = @transform_5, window_bounds = array<i64: 2, 64>}, {pipeline_mode = #tpu.pipeline_mode<synchronous>, transform_indices = @transform_6, window_bounds = array<i64: 2, 1>}, {transform_indices = @transform_7, window_bounds = array<i64: 2, 128>}]} {
    %c0 = arith.constant 0 : index
    %c0_0 = arith.constant 0 : index
    %0 = vector.load %arg1[%c0, %c0_0] : memref<2x128xf32, #tpu.memory_space<vmem>>, vector<2x128xf32>
    %c0_1 = arith.constant 0 : index
    %c0_2 = arith.constant 0 : index
    %1 = vector.load %arg2[%c0_1, %c0_2] : memref<64x2xf32, #tpu.memory_space<vmem>>, vector<64x2xf32>
    %2 = vector.extract_strided_slice %1 {offsets = [0, 0], sizes = [64, 1], strides = [1, 1]} : vector<64x2xf32> to vector<64x1xf32>
    %3 = vector.extract_strided_slice %0 {offsets = [0, 0], sizes = [1, 128], strides = [1, 1]} : vector<2x128xf32> to vector<1x128xf32>
    %4 = vector.broadcast %2 : vector<64x1xf32> to vector<64x128xf32>
    %5 = vector.broadcast %3 : vector<1x128xf32> to vector<64x128xf32>
    %6 = arith.mulf %4, %5 : vector<64x128xf32>
    %7 = vector.extract_strided_slice %1 {offsets = [0, 1], sizes = [64, 1], strides = [1, 1]} : vector<64x2xf32> to vector<64x1xf32>
    %8 = vector.extract_strided_slice %0 {offsets = [1, 0], sizes = [1, 128], strides = [1, 1]} : vector<2x128xf32> to vector<1x128xf32>
    %9 = vector.broadcast %7 : vector<64x1xf32> to vector<64x128xf32>
    %10 = vector.broadcast %8 : vector<1x128xf32> to vector<64x128xf32>
    %11 = arith.mulf %9, %10 : vector<64x128xf32>
    %12 = arith.addf %6, %11 : vector<64x128xf32>
    %c0_3 = arith.constant 0 : index
    %c0_4 = arith.constant 0 : index
    %13 = vector.load %arg3[%c0_3, %c0_4] : memref<64x1xf32, #tpu.memory_space<vmem>>, vector<64x1xf32>
    %14 = vector.broadcast %13 : vector<64x1xf32> to vector<64x128xf32>
    %15 = arith.addf %12, %14 : vector<64x128xf32>
    %cst = arith.constant 0.000000e+00 : f32
    %16 = vector.broadcast %cst : f32 to vector<64x128xf32>
    %17 = arith.maximumf %15, %16 : vector<64x128xf32>
    %c0_5 = arith.constant 0 : index
    %c0_6 = arith.constant 0 : index
    %18 = vector.load %arg4[%c0_5, %c0_6] : memref<64x64xf32, #tpu.memory_space<vmem>>, vector<64x64xf32>
    %cst_7 = arith.constant dense<0.000000e+00> : vector<64x128xf32>
    %19 = tpu.matmul %18, %17, %cst_7 {dimension_numbers = #tpu.dot_dimension_numbers<[1], [0], [0], [1], [0, 0, 1, 1], [], []>} : vector<64x64xf32>, vector<64x128xf32>, vector<64x128xf32> -> vector<64x128xf32>
    %c0_8 = arith.constant 0 : index
    %c0_9 = arith.constant 0 : index
    %20 = vector.load %arg5[%c0_8, %c0_9] : memref<64x1xf32, #tpu.memory_space<vmem>>, vector<64x1xf32>
    %21 = vector.broadcast %20 : vector<64x1xf32> to vector<64x128xf32>
    %22 = arith.addf %19, %21 : vector<64x128xf32>
    %cst_10 = arith.constant 0.000000e+00 : f32
    %23 = vector.broadcast %cst_10 : f32 to vector<64x128xf32>
    %24 = arith.maximumf %22, %23 : vector<64x128xf32>
    %c0_11 = arith.constant 0 : index
    %c0_12 = arith.constant 0 : index
    %25 = vector.load %arg6[%c0_11, %c0_12] : memref<2x64xf32, #tpu.memory_space<vmem>>, vector<2x64xf32>
    %cst_13 = arith.constant dense<0.000000e+00> : vector<2x128xf32>
    %26 = tpu.matmul %25, %24, %cst_13 {dimension_numbers = #tpu.dot_dimension_numbers<[1], [0], [0], [1], [0, 0, 1, 1], [], []>} : vector<2x64xf32>, vector<64x128xf32>, vector<2x128xf32> -> vector<2x128xf32>
    %c0_14 = arith.constant 0 : index
    %c0_15 = arith.constant 0 : index
    %27 = vector.load %arg7[%c0_14, %c0_15] : memref<2x1xf32, #tpu.memory_space<vmem>>, vector<2x1xf32>
    %28 = vector.broadcast %27 : vector<2x1xf32> to vector<2x128xf32>
    %29 = arith.addf %26, %28 : vector<2x128xf32>
    %c0_16 = arith.constant 0 : index
    %c0_17 = arith.constant 0 : index
    %30 = vector.load %arg8[%c0_16, %c0_17] : memref<2x128xf32, #tpu.memory_space<vmem>>, vector<2x128xf32>
    tpu.vector_store %arg8[%c0_16, %c0_17], %29 {strides = array<i32>} : memref<2x128xf32, #tpu.memory_space<vmem>>, vector<2x128xf32>,
    return
  }
  func.func @transform_0(%arg0: i32) -> (i32, i32) {
    %c0_i32 = arith.constant 0 : i32
    %c0_i32_0 = arith.constant 0 : i32
    return %c0_i32, %arg0 : i32, i32
  }
  func.func @transform_1(%arg0: i32) -> (i32, i32) {
    %c0_i32 = arith.constant 0 : i32
    %c0_i32_0 = arith.constant 0 : i32
    %c0_i32_1 = arith.constant 0 : i32
    return %c0_i32, %c0_i32_0 : i32, i32
  }
  func.func @transform_2(%arg0: i32) -> (i32, i32) {
    %c0_i32 = arith.constant 0 : i32
    %c0_i32_0 = arith.constant 0 : i32
    %c0_i32_1 = arith.constant 0 : i32
    return %c0_i32, %c0_i32_0 : i32, i32
  }
  func.func @transform_3(%arg0: i32) -> (i32, i32) {
    %c0_i32 = arith.constant 0 : i32
    %c0_i32_0 = arith.constant 0 : i32
    %c0_i32_1 = arith.constant 0 : i32
    return %c0_i32, %c0_i32_0 : i32, i32
  }
  func.func @transform_4(%arg0: i32) -> (i32, i32) {
    %c0_i32 = arith.constant 0 : i32
    %c0_i32_0 = arith.constant 0 : i32
    %c0_i32_1 = arith.constant 0 : i32
    return %c0_i32, %c0_i32_0 : i32, i32
  }
  func.func @transform_5(%arg0: i32) -> (i32, i32) {
    %c0_i32 = arith.constant 0 : i32
    %c0_i32_0 = arith.constant 0 : i32
    %c0_i32_1 = arith.constant 0 : i32
    return %c0_i32, %c0_i32_0 : i32, i32
  }
  func.func @transform_6(%arg0: i32) -> (i32, i32) {
    %c0_i32 = arith.constant 0 : i32
    %c0_i32_0 = arith.constant 0 : i32
    %c0_i32_1 = arith.constant 0 : i32
    return %c0_i32, %c0_i32_0 : i32, i32
  }
  func.func @transform_7(%arg0: i32) -> (i32, i32) {
    %c0_i32 = arith.constant 0 : i32
    %c0_i32_0 = arith.constant 0 : i32
    return %c0_i32, %arg0 : i32, i32
  }
}

</mosaic_0001>

<bundles_post_ra>
// kernel: tpu_custom_call.1
= control target key start
LH: loop header
LB: loop body
LE: loop exit
PB: predicated region body
PF: predicated region fallthrough
CT: control target
= control target key end

     0   :  { %v612_v2 = vmov 1   ;;  %v613_v3 = vmov 0   ;;  %s774_s0 = inlined_call_operand.vmem [shape: f32[2,128], index: 0, kind: input, shape index: {}]   ;;  %s775_s1 = inlined_call_operand.vmem [shape: f32[64,2], index: 1, kind: input, shape index: {}]   ;;  %s776_s2 = inlined_call_operand.vmem [shape: f32[64,1], index: 2, kind: input, shape index: {}]   ;;  %s777_s3 = inlined_call_operand.vmem [shape: f32[64,64], index: 3, kind: input, shape index: {}]   ;;  %s778_s4 = inlined_call_operand.vmem [shape: f32[64,1], index: 4, kind: input, shape index: {}]   ;;  %s779_s5 = inlined_call_operand.vmem [shape: f32[2,64], index: 5, kind: input, shape index: {}]   ;;  %s780_s6 = inlined_call_operand.vmem [shape: f32[2,1], index: 6, kind: input, shape index: {}]   ;;  %s781_s7 = inlined_call_operand.hbm [shape: f32[2,128], index: 7, kind: output, shape index: {}]  }
   0x1   :  { %v35_v0 = vld [vmem:[%s775_s1 + $0x38] sm:$0xff]  ;;  %v34_v1 = vld [vmem:[%s775_s1 + $0x30] sm:$0xff]  ;;  %579 = vset.pattern.permute.xlu0 %v612_v2  ;;  %580 = vset.pattern.permute.xlu1 %v613_v3  ;;  %v33_v4 = vld [vmem:[%s775_s1 + $0x28] sm:$0xff] }
   0x2   :  { %117 = vperm.xlu0 %579, %v35_v0   ;;  %68 = vperm.xlu1 %580, %v34_v1   ;;  %v30_v5 = vld [vmem:[%s775_s1 + $0x10] sm:$0xff] }
   0x6   :  { %581 = vset.pattern.permute.xlu1 %v612_v2  ;;  %109 = vperm.xlu0 %579, %v33_v4  }
   0x7   :  { %113 = vperm.xlu1 %581, %v34_v1  }
   0x8   :  { %12 = vsyncpa [#allocation3], 0  ;;  %v29_v6 = vld [vmem:[%s775_s1 + $0x8] sm:$0xff]  ;;  %v147_v7 = vld [vmem:[%s776_s2 + $0x38] sm:$0xff]  ;;  %vm260_vm0 = vcmask 523264   ;;  %v76_v30 = vlaneseq  ;;  %vm615_vm1 = vmmov 0  }
   0x9   :  { %v32_v8 = vld [vmem:[%s775_s1 + $0x20] sm:$0xff]  ;;  %v146_v9 = vld [vmem:[%s776_s2 + $0x30] sm:$0xff]  ;;  %v31_v10 = vld [vmem:[%s775_s1 + $0x18] sm:$0xff]  ;;  %s616_s18 = smov [#allocation2]  }
   0xa   :  { %97 = vperm.xlu0 %579, %v30_v5   ;;  %v145_v11 = vld [vmem:[%s776_s2 + $0x28] sm:$0xff]  ;;  %v28_v12 = vld [vmem:[%s775_s1] sm:$0xff]  ;;  %v219_v15 = vld [vmem:[%s778_s4 + $0x38] sm:$0xff]  ;;  %v77_v33 = vshrl.u32 %v76_v30, 7  ;;  %s485_s19 = sshll.u32 %s616_s18, 4  ;;  %s486_s19 = int_to_ptr.vmem [resolvable:$true] %s485_s19 }
   0xb   :  { %582 = vset.pattern.permute.xlu1 %v613_v3  ;;  %v141_v13 = vld [vmem:[%s776_s2 + $0x8] sm:$0xff]  ;;  %v144_v14 = vld [vmem:[%s776_s2 + $0x20] sm:$0xff]  ;;  %v143_v17 = vld [vmem:[%s776_s2 + $0x18] sm:$0xff]  ;;  %s590_s20 = scalar_lea.vmem %s486_s19, 32  ;;  %p595_p1 = scmp.lt.s32.totalorder %s486_s19, %s486_s19 }
   0xc   :  { %63 = vperm.xlu1 %582, %v33_v4   ;;  %v217_v16 = vld [vmem:[%s778_s4 + $0x28] sm:$0xff]  ;;  %v215_v18 = vld [vmem:[%s778_s4 + $0x18] sm:$0xff]  ;;  %v142_v20 = vld [vmem:[%s776_s2 + $0x10] sm:$0xff]  ;;  %v122_v35 = vsub.s32 1, %v77_v33  ;;  %v78_v37 = vsub.s32 0, %v77_v33  ;;  %p591_p0 = scmp.ne.s32.totalorder %s486_s19, %s590_s20  ;;  %p596_p2 = scmp.lt.s32.totalorder %s590_s20, %s590_s20 }
   0xd   :  { %v213_v19 = vld [vmem:[%s778_s4 + $0x8] sm:$0xff]  ;;  %v399_v21 = vld [vmem:[%s780_s6] sm:$0x3]  ;;  %v218_v24 = vld [vmem:[%s778_s4 + $0x30] sm:$0xff] }
   0xe   :  { %93 = vperm.xlu0 %579, %v29_v6   ;;  %v140_v22 = vld [vmem:[%s776_s2] sm:$0xff]  ;;  %v214_v26 = vld [vmem:[%s778_s4 + $0x10] sm:$0xff]  ;;  %p597_p3 = por %p596_p2, %p595_p1 }
   0xf   :  { %v204_v23 = vld [vmem:[%s777_s3] sm:$0xff] }
  0x10   :  { %185 = vperm.xlu1 %582, %v147_v7   ;;  %543 = vmatprep.mubr.msk.f32.mxu0 %vm260_vm0, %v204_v23  ;;  %v216_v25 = vld [vmem:[%s778_s4 + $0x20] sm:$0xff]  ;;  %p598_p4 = pnand %p597_p3, %p591_p0 }
  0x11   :  { %v212_v27 = vld [vmem:[%s778_s4] sm:$0xff] }
  0x12   :  { %587 = vset.pattern.permute.xlu0 %v613_v3  ;;  %v27_v39 = vld [vmem:[%s774_s0] sm:$0x3] }
  0x13   :  { %73 = vperm.xlu0 %587, %v35_v0   ;;  %v123_v40 = vrot.slane %v27_v39, %v122_v35  ;;  %v79_v42 = vrot.slane %v27_v39, %v78_v37  ;;  %v207_v37 = vld [vmem:[%s777_s3 + $0x18] sm:$0xff]  ;;  %v209_v39 = vld [vmem:[%s777_s3 + $0x28] sm:$0xff] }
  0x14   :  { %583 = vset.pattern.permute.xlu1 %v612_v2 }
  0x15   :  { %105 = vperm.xlu1 %583, %v32_v8  }
  0x17   :  { %58 = vperm.xlu0 %587, %v32_v8  }
  0x19   :  { %584 = vset.pattern.permute.xlu1 %v613_v3 }
  0x1a   :  { %180 = vperm.xlu1 %584, %v146_v9  }
  0x1b   :  { %53 = vperm.xlu0 %587, %v31_v10  }
  0x1e   :  { %585 = vset.pattern.permute.xlu1 %v612_v2 }
  0x1f   :  { %101 = vperm.xlu1 %585, %v31_v10   ;;  %175 = vperm.xlu0 %587, %v145_v11  }
  0x23   :  { %586 = vset.pattern.permute.xlu1 %v613_v3  ;;  %38 = vperm.xlu0 %587, %v28_v12  }
  0x24   :  { %48 = vperm.xlu1 %586, %v30_v5  }
  0x27   :  { %155 = vperm.xlu0 %587, %v141_v13  }
  0x28   :  { %170 = vperm.xlu1 %586, %v144_v14  }
  0x2b   :  { %257 = vperm.xlu0 %587, %v219_v15  }
  0x2c   :  { %43 = vperm.xlu1 %586, %v29_v6  }
  0x2f   :  { %247 = vperm.xlu0 %587, %v217_v16  }
  0x30   :  { %165 = vperm.xlu1 %586, %v143_v17  }
  0x33   :  { %237 = vperm.xlu0 %587, %v215_v18  }
  0x34   :  { %588 = vset.pattern.permute.xlu1 %v612_v2 }
  0x35   :  { %89 = vperm.xlu1 %588, %v28_v12  }
  0x37   :  { %227 = vperm.xlu0 %587, %v213_v19  }
  0x39   :  { %589 = vset.pattern.permute.xlu1 %v613_v3 }
  0x3a   :  { %160 = vperm.xlu1 %589, %v142_v20  }
  0x3b   :  { %402 = vperm.xlu0 %587, %v399_v21  }
  0x3e   :  { %150 = vperm.xlu1 %589, %v140_v22  }
  0x42   :  { %252 = vperm.xlu1 %589, %v218_v24  }
  0x46   :  { %242 = vperm.xlu1 %589, %v216_v25  }
  0x4a   :  { %232 = vperm.xlu1 %589, %v214_v26  }
  0x4e   :  { %222 = vperm.xlu1 %589, %v212_v27  }
  0x7d   :  { %v69_v28 = vpop.permute.xlu1 %68  ;;  %v118_v29 = vpop.permute.xlu0 %117 }
  0x7e   :  { %v131_v43 = vmul.f32 %v123_v40, %v118_v29  ;;  %v86_v49 = vmul.f32 %v79_v42, %v69_v28 }
  0x81   :  { %v110_v31 = vpop.permute.xlu0 %109 }
  0x82   :  { %v114_v32 = vpop.permute.xlu1 %113  ;;  %v129_v53 = vmul.f32 %v123_v40, %v110_v31 }
  0x83   :  { %v130_v46 = vmul.f32 %v123_v40, %v114_v32 }
  0x85   :  { %v98_v34 = vpop.permute.xlu0 %97  ;;  %v138_v52 = vadd.f32 %v130_v46, %v86_v49 }
  0x86   :  { %v126_v20 = vmul.f32 %v123_v40, %v98_v34  ;;  %v205_v34 = vld [vmem:[%s777_s3 + $0x8] sm:$0xff] }
  0x87   :  { %v64_v36 = vpop.permute.xlu1 %63 }
  0x88   :  { %v85_v54 = vmul.f32 %v79_v42, %v64_v36  ;;  %v206_v36 = vld [vmem:[%s777_s3 + $0x10] sm:$0xff] }
  0x89   :  { %v94_v38 = vpop.permute.xlu0 %93 }
  0x8a   :  { %v137_v60 = vadd.f32 %v129_v53, %v85_v54  ;;  %v125_v17 = vmul.f32 %v123_v40, %v94_v38  ;;  %v208_v38 = vld [vmem:[%s777_s3 + $0x20] sm:$0xff] }
  0x8b   :  { %v186_v41 = vpop.permute.xlu1 %185 }
  0x8e   :  { %v74_v44 = vpop.permute.xlu0 %73 }
  0x8f   :  { %v87_v45 = vmul.f32 %v79_v42, %v74_v44 }
  0x90   :  { %v106_v47 = vpop.permute.xlu1 %105 }
  0x91   :  { %v139_v48 = vadd.f32 %v131_v43, %v87_v45  ;;  %v128_v3 = vmul.f32 %v123_v40, %v106_v47 }
  0x92   :  { %v59_v50 = vpop.permute.xlu0 %58 }
  0x93   :  { %v195_v51 = vadd.f32 %v186_v41, %v139_v48  ;;  %v84_v1 = vmul.f32 %v79_v42, %v59_v50  ;;  %v211_v41 = vld [vmem:[%s777_s3 + $0x38] sm:$0xff] }
  0x95   :  { %v181_v55 = vpop.permute.xlu1 %180  ;;  %v203_v56 = vmax.f32 %v195_v51, 0.0  ;;  %v136_v4 = vadd.f32 %v128_v3, %v84_v1 }
  0x96   :  { %v194_v57 = vadd.f32 %v181_v55, %v138_v52  ;;  %v54_v58 = vpop.permute.xlu0 %53 }
  0x97   :  { %527 = vmatprep.subr.mxu0 %v203_v56  ;;  %v83_v7 = vmul.f32 %v79_v42, %v54_v58 }
  0x98   :  { %v202_v59 = vmax.f32 %v194_v57, 0.0  ;;  %528 = vmatpush3.msra.mxu0 %v203_v56 }
  0x9a   :  { %v102_v61 = vpop.permute.xlu1 %101  ;;  %v176_v62 = vpop.permute.xlu0 %175  ;;  %529 = vmatprep.subr.mxu0 %v202_v59 }
  0x9b   :  { %v193_v63 = vadd.f32 %v176_v62, %v137_v60  ;;  %530 = vmatpush3.msra.mxu0 %v202_v59  ;;  %v127_v8 = vmul.f32 %v123_v40, %v102_v61 }
  0x9d   :  { %v201_v0 = vmax.f32 %v193_v63, 0.0  ;;  %v135_v11 = vadd.f32 %v127_v8, %v83_v7 }
  0x9e   :  { %v39_v16 = vpop.permute.xlu0 %38 }
  0x9f   :  { %v49_v2 = vpop.permute.xlu1 %48  ;;  %531 = vmatprep.subr.mxu0 %v201_v0  ;;  %v80_v26 = vmul.f32 %v79_v42, %v39_v16 }
  0xa0   :  { %532 = vmatpush3.msra.mxu0 %v201_v0  ;;  %v82_v18 = vmul.f32 %v79_v42, %v49_v2 }
  0xa2   :  { %v134_v23 = vadd.f32 %v126_v20, %v82_v18  ;;  %v156_v24 = vpop.permute.xlu0 %155 }
  0xa3   :  { %v171_v5 = vpop.permute.xlu1 %170 }
  0xa4   :  { %v192_v6 = vadd.f32 %v171_v5, %v136_v4 }
  0xa6   :  { %v200_v9 = vmax.f32 %v192_v6, 0.0  ;;  %v258_v45 = vpop.permute.xlu0 %257 }
  0xa7   :  { %v44_v10 = vpop.permute.xlu1 %43 }
  0xa8   :  { %533 = vmatprep.subr.mxu0 %v200_v9  ;;  %v81_v14 = vmul.f32 %v79_v42, %v44_v10  ;;  %v614_v42 = vmov 0.0  }
  0xa9   :  { %534 = vmatpush3.msra.mxu0 %v200_v9  ;;  %555 = vmatprep.subr.mxu1 %v614_v42 }
  0xaa   :  { %v133_v21 = vadd.f32 %v125_v17, %v81_v14  ;;  %571 = vmatprep.mubr.msk.f32.mxu1 %vm615_vm1, %v614_v42  ;;  %v248_v50 = vpop.permute.xlu0 %247 }
  0xab   :  { %v166_v12 = vpop.permute.xlu1 %165 }
  0xac   :  { %v191_v13 = vadd.f32 %v166_v12, %v135_v11  ;;  %v189_v28 = vadd.f32 %v156_v24, %v133_v21  ;;  %v398_v11 = vld [vmem:[%s779_s5] sm:$0x3] }
  0xae   :  { %v199_v15 = vmax.f32 %v191_v13, 0.0  ;;  %v197_v33 = vmax.f32 %v189_v28, 0.0  ;;  %v238_v59 = vpop.permute.xlu0 %237 }
  0xb0   :  { %v90_v19 = vpop.permute.xlu1 %89  ;;  %535 = vmatprep.subr.mxu0 %v199_v15 }
  0xb1   :  { %536 = vmatpush3.msra.mxu0 %v199_v15  ;;  %v124_v22 = vmul.f32 %v123_v40, %v90_v19  ;;  %v210_v40 = vld [vmem:[%s777_s3 + $0x30] sm:$0xff] }
  0xb2   :  { %v228_v3 = vpop.permute.xlu0 %227 }
  0xb3   :  { %v132_v30 = vadd.f32 %v124_v22, %v80_v26 }
  0xb5   :  { %v161_v25 = vpop.permute.xlu1 %160 }
  0xb6   :  { %v190_v27 = vadd.f32 %v161_v25, %v134_v23  ;;  %v403_v12 = vpop.permute.xlu0 %402 }
  0xb8   :  { %v198_v29 = vmax.f32 %v190_v27, 0.0 }
  0xb9   :  { %v151_v31 = vpop.permute.xlu1 %150 }
  0xba   :  { %v188_v32 = vadd.f32 %v151_v31, %v132_v30  ;;  %537 = vmatprep.subr.mxu0 %v198_v29 }
  0xbb   :  { %538 = vmatpush3.msra.mxu0 %v198_v29 }
  0xbc   :  { %v196_v35 = vmax.f32 %v188_v32, 0.0  ;;  %539 = vmatprep.subr.mxu0 %v197_v33 }
  0xbd   :  { %540 = vmatpush3.msra.mxu0 %v197_v33  ;;  %v253_v47 = vpop.permute.xlu1 %252 }
  0xbe   :  { %541 = vmatprep.subr.mxu0 %v196_v35 }
  0xbf   :  { %542 = vmatpush3.msra.mxu0 %v196_v35 }
  0xc0   :  { %544 = vmatmul.mubr.msk.f32.vlgmr.msra.gmra.mxu0 %vm260_vm0, %v205_v34 }
  0xc1   :  { %546 = vmatprep.mubr.msk.f32.mxu0 %vm260_vm0, %v206_v36  ;;  %v243_v52 = vpop.permute.xlu1 %242 }
  0xc4   :  { %547 = vmatmul.mubr.msk.f32.gmra.mxu0 %vm260_vm0, %v207_v37 }
  0xc5   :  { %549 = vmatprep.mubr.msk.f32.mxu0 %vm260_vm0, %v208_v38  ;;  %v233_v62 = vpop.permute.xlu1 %232 }
  0xc8   :  { %550 = vmatmul.mubr.msk.f32.gmra.mxu0 %vm260_vm0, %v209_v39 }
  0xc9   :  { %552 = vmatprep.mubr.msk.f32.mxu0 %vm260_vm0, %v210_v40  ;;  %v223_v6 = vpop.permute.xlu1 %222 }
  0xcc   :  { %553 = vmatmul.mubr.msk.f32.gmra.mxu0 %vm260_vm0, %v211_v41 }
 0x180   :  { %v545_v43 = vpop.f32.mrf.mxu0 }
 0x181   :  { %v357_v4 = vadd.f32 %v545_v43, %v228_v3 }
 0x182   :  { %v351_v44 = vpop.f32.mrf.mxu0 }
 0x183   :  { %v352_v7 = vadd.f32 %v351_v44, %v223_v6  ;;  %v391_v9 = vmax.f32 %v357_v4, 0.0 }
 0x184   :  { %v548_v46 = vpop.f32.mrf.mxu0 }
 0x185   :  { %v367_v63 = vadd.f32 %v548_v46, %v238_v59  ;;  %v390_v10 = vmax.f32 %v352_v7, 0.0 }
 0x186   :  { %v361_v48 = vpop.f32.mrf.mxu0 }
 0x187   :  { %v362_v1 = vadd.f32 %v361_v48, %v233_v62  ;;  %v393_v5 = vmax.f32 %v367_v63, 0.0 }
 0x188   :  { %v551_v49 = vpop.f32.mrf.mxu0 }
 0x189   :  { %v377_v56 = vadd.f32 %v551_v49, %v248_v50  ;;  %v392_v8 = vmax.f32 %v362_v1, 0.0 }
 0x18a   :  { %v371_v51 = vpop.f32.mrf.mxu0 }
 0x18b   :  { %v372_v60 = vadd.f32 %v371_v51, %v243_v52  ;;  %v395_v0 = vmax.f32 %v377_v56, 0.0 }
 0x18c   :  { %v554_v53 = vpop.f32.mrf.mxu0 }
 0x18d   :  { %v387_v54 = vadd.f32 %v554_v53, %v258_v45  ;;  %v394_v2 = vmax.f32 %v372_v60, 0.0 }
 0x18e   :  { %v381_v55 = vpop.f32.mrf.mxu0 }
 0x18f   :  { %v397_v57 = vmax.f32 %v387_v54, 0.0  ;;  %v382_v58 = vadd.f32 %v381_v55, %v253_v47 }
 0x191   :  { %v396_v61 = vmax.f32 %v382_v58, 0.0  ;;  %556 = vmatpush3.msra.mxu1 %v397_v57 }
 0x192   :  { %557 = vmatprep.subr.mxu1 %v614_v42 }
 0x193   :  { %558 = vmatpush3.msra.mxu1 %v396_v61 }
 0x194   :  { %559 = vmatprep.subr.mxu1 %v614_v42 }
 0x195   :  { %560 = vmatpush3.msra.mxu1 %v395_v0 }
 0x196   :  { %561 = vmatprep.subr.mxu1 %v614_v42 }
 0x197   :  { %562 = vmatpush3.msra.mxu1 %v394_v2 }
 0x198   :  { %563 = vmatprep.subr.mxu1 %v614_v42 }
 0x199   :  { %564 = vmatpush3.msra.mxu1 %v393_v5 }
 0x19a   :  { %565 = vmatprep.subr.mxu1 %v614_v42 }
 0x19b   :  { %566 = vmatpush3.msra.mxu1 %v392_v8 }
 0x19c   :  { %567 = vmatprep.subr.mxu1 %v614_v42 }
 0x19d   :  { %568 = vmatpush3.msra.mxu1 %v391_v9 }
 0x19e   :  { %569 = vmatprep.subr.mxu1 %v614_v42 }
 0x19f   :  { %570 = vmatpush3.msra.mxu1 %v390_v10 }
 0x1a0   :  { %572 = vmatmul.mubr.msk.f32.vlgmr.msra.gmra.mxu1 %vm260_vm0, %v398_v11 }
 0x260   :  { %v474_v13 = vpop.f32.mrf.mxu1 }
 0x261   :  { %v475_v14 = vadd.f32 %v474_v13, %v403_v12 }
 0x262   :  { %v573_v15 = vpop.f32.mrf.mxu1 }
 0x263   :  { %478 = vst [vmem:[#allocation2] sm:$0x3] %v475_v14 }
 0x264   :  { %601 = shalt.err (!%p598_p4)
}
 0x265   :  { %488 = dma.vmem_to_hbm [thread:$0]  %s486_s19, 32, %s781_s7, [#allocation3]  }
 0x266   :  { %610 = dma.done.wait [#allocation3], 32  }
 0x267   :  { %611 = vsyncadd [#allocation3], 4294967264 }
 0x268   :  { %492 = vsyncpa [#allocation3], 1 }

</bundles_post_ra>
